<compile_context>
chip_gen: v5e
topology: v5e:2x2
jax: 0.10.0
libtpu: 0.0.40
codegen_flags: <defaults>
</compile_context>

<pallas_src>
import jax
import jax.numpy as jnp
from jax.experimental import pallas as pl
from jax.experimental.pallas import tpu as pltpu


_MAX_SINGLE_TK = 4096      # collapse the K grid when F fits in one tile
_TK_CANDIDATES = (4096, 2048, 1024, 512, 256, 128)


def _round_up(x, m):
    return (x + m - 1) // m * m


# ---------------------------------------------------------------------------
# Kernels
# ---------------------------------------------------------------------------
def _in_bottleneck_kernel_single(x_ref, w_ref, b_ref, eps_ref, out_ref):
    """Whole problem resident in VMEM: one dot + epilogue, no accumulator."""
    L = eps_ref.shape[-1]
    # f32 activations cast to bf16 on the VPU, bf16 x bf16 -> f32 on the MXU.
    acc = jnp.dot(x_ref[...].astype(jnp.bfloat16), w_ref[...],
                  preferred_element_type=jnp.float32) + b_ref[...]
    mu = acc[:, :L]
    lv = acc[:, L:]
    z = mu + jnp.exp(0.5 * lv) * eps_ref[...]          # reparameterise (f32)
    out_ref[:, :2 * L] = acc                           # packed [mu | logvar]
    out_ref[:, 2 * L:] = z


def _in_bottleneck_kernel_multi(x_ref, w_ref, b_ref, eps_ref, out_ref):
    """K-tiled path: accumulate straight into the resident f32 output block."""
    k = pl.program_id(0)
    L = eps_ref.shape[-1]

    @pl.when(k == 0)
    def _init():
        out_ref[...] = jnp.zeros_like(out_ref)

    part = jnp.dot(x_ref[...].astype(jnp.bfloat16), w_ref[...],
                   preferred_element_type=jnp.float32)
    out_ref[:, :2 * L] += part

    @pl.when(k == pl.num_programs(0) - 1)
    def _epilogue():
        acc = out_ref[:, :2 * L] + b_ref[...]
        mu = acc[:, :L]
        lv = acc[:, L:]
        z = mu + jnp.exp(0.5 * lv) * eps_ref[...]
        out_ref[:, :2 * L] = acc
        out_ref[:, 2 * L:] = z


# ---------------------------------------------------------------------------
# One-time parameter preparation (hoisted out of the per-call path)
# ---------------------------------------------------------------------------
def prepare_bottleneck_params(w_mu, b_mu, w_lv, b_lv):
    """Fuse the two Linear heads into one bf16 (Fp, 2L) weight + f32 bias."""
    F, L = w_mu.shape
    if F <= _MAX_SINGLE_TK:
        Fp = F                                   # single-step: no padding needed
    else:
        Fp = _round_up(F, 128)                   # K-tiled: make F 128-aligned
    w = jnp.concatenate([w_mu, w_lv], axis=1).astype(jnp.bfloat16)
    if Fp != F:
        w = jnp.zeros((Fp, 2 * L), jnp.bfloat16).at[:F, :].set(w)
    b = jnp.concatenate([b_mu.reshape(1, L), b_lv.reshape(1, L)],
                        axis=1).astype(jnp.float32)
    return w, b


# ---------------------------------------------------------------------------
# Forward
# ---------------------------------------------------------------------------
def in_bottleneck(x, w_fused, b_fused, eps):
    """x: (B, C, H, W) f32. Returns (mu, log_variance, z), each (B, L) f32."""
    B = x.shape[0]
    x2d = x.reshape(B, -1)                       # same flatten as torch, stays f32
    F = x2d.shape[1]
    Fp, twoL = w_fused.shape
    L = twoL // 2
    out_cols = 3 * L                             # [mu | logvar | z]

    # Choose K tiling: collapse to a single resident step when F fits.
    if Fp <= _MAX_SINGLE_TK:
        TK, n_k = Fp, 1
    else:
        TK = next(t for t in _TK_CANDIDATES if Fp % t == 0)
        n_k = Fp // TK

    # Only the (rare) padded-F path needs x padding; zeros contribute nothing.
    if Fp != F:
        x2d = jnp.concatenate(
            [x2d, jnp.zeros((B, Fp - F), x2d.dtype)], axis=1)

    kernel = (_in_bottleneck_kernel_single if n_k == 1
              else _in_bottleneck_kernel_multi)

    grid_spec = pltpu.PrefetchScalarGridSpec(
        num_scalar_prefetch=0,
        grid=(n_k,),
        in_specs=[
            pl.BlockSpec((B, TK), lambda k: (0, k)),       # x tile (f32, stream K)
            pl.BlockSpec((TK, twoL), lambda k: (k, 0)),    # fused bf16 weight tile
            pl.BlockSpec((1, twoL), lambda k: (0, 0)),     # fused f32 bias
            pl.BlockSpec((B, L), lambda k: (0, 0)),        # eps
        ],
        out_specs=pl.BlockSpec((B, out_cols), lambda k: (0, 0)),  # [mu|lv|z] slab
    )

    out = pl.pallas_call(
        kernel,
        out_shape=jax.ShapeDtypeStruct((B, out_cols), jnp.float32),
        grid_spec=grid_spec,
        compiler_params=pltpu.CompilerParams(
            dimension_semantics=("arbitrary",)),
    )(x2d, w_fused, b_fused, eps)

    return out[:, :L], out[:, L:2 * L], out[:, 2 * L:]


# ---------------------------------------------------------------------------
# Init matching torch.nn.Linear's U(-1/sqrt(F), 1/sqrt(F))
# ---------------------------------------------------------------------------
def init_params(key, in_features, latent_dim):
    k1, k2, k3, k4 = jax.random.split(key, 4)
    bound = 1.0 / jnp.sqrt(jnp.float32(in_features))
    w_mu = jax.random.uniform(k1, (in_features, latent_dim), jnp.float32,
                              -bound, bound)
    b_mu = jax.random.uniform(k2, (1, latent_dim), jnp.float32, -bound, bound)
    w_lv = jax.random.uniform(k3, (in_features, latent_dim), jnp.float32,
                              -bound, bound)
    b_lv = jax.random.uniform(k4, (1, latent_dim), jnp.float32, -bound, bound)
    return w_mu, b_mu, w_lv, b_lv


if __name__ == "__main__":
    key = jax.random.PRNGKey(0)
    k_x, k_p, k_eps = jax.random.split(key, 3)

    # NCHW input; forward flattens it -> in_features = 4*16*16 = 1024.
    B, C, H, W = 2, 4, 16, 16
    latent_dim = 32

    x = jax.random.normal(k_x, (B, C, H, W), jnp.float32)
    w_mu, b_mu, w_lv, b_lv = init_params(k_p, C * H * W, latent_dim)
    eps = jax.random.normal(k_eps, (B, latent_dim), jnp.float32)

    # One-time fused/bf16 weight prep (hoisted out of the per-call path).
    w_fused, b_fused = prepare_bottleneck_params(w_mu, b_mu, w_lv, b_lv)

    fwd = jax.jit(in_bottleneck)
    mu, log_var, z = jax.block_until_ready(fwd(x, w_fused, b_fused, eps))

    # Reference in plain JAX using the same bf16 weight/activation
    # quantisation (f32 accumulate), so only accumulation order differs.
    # TODO(synk): bf16 weight/activation quantisation deviates from the pure
    # f32 torch module; validate against an f32 reference if bit-parity matters.
    x2d = x.reshape(B, -1).astype(jnp.bfloat16).astype(jnp.float32)
    wmu32 = w_mu.astype(jnp.bfloat16).astype(jnp.float32)
    wlv32 = w_lv.astype(jnp.bfloat16).astype(jnp.float32)
    mu_ref = x2d @ wmu32 + b_mu
    lv_ref = x2d @ wlv32 + b_lv
    z_ref = mu_ref + jnp.exp(0.5 * lv_ref) * eps

    assert jnp.allclose(mu, mu_ref, atol=1e-3, rtol=1e-3), "mu mismatch"
    assert jnp.allclose(log_var, lv_ref, atol=1e-3, rtol=1e-3), \
        "log_variance mismatch"
    assert jnp.allclose(z, z_ref, atol=1e-3, rtol=1e-3), "z mismatch"

    print("KERNEL_OK")
</pallas_src>

<mosaic_0001>
module attributes {stable_mosaic.version = 11 : i64} {
  func.func @_in_bottleneck_kernel_single(%arg0: i32, %arg1: memref<2x1024xf32, #tpu.memory_space<vmem>>, %arg2: memref<1024x64xbf16, #tpu.memory_space<vmem>>, %arg3: memref<1x64xf32, #tpu.memory_space<vmem>>, %arg4: memref<2x32xf32, #tpu.memory_space<vmem>>, %arg5: memref<2x96xf32, #tpu.memory_space<vmem>>) attributes {dimension_semantics = [#tpu.dimension_semantics<arbitrary>], iteration_bounds = array<i64: 1>, scalar_prefetch = 0 : i64, scratch_operands = 0 : i64, tpu.core_type = #tpu.core_type<tc>, window_params = [{transform_indices = @transform_0, window_bounds = array<i64: 2, 1024>}, {transform_indices = @transform_1, window_bounds = array<i64: 1024, 64>}, {pipeline_mode = #tpu.pipeline_mode<synchronous>, transform_indices = @transform_2, window_bounds = array<i64: 1, 64>}, {pipeline_mode = #tpu.pipeline_mode<synchronous>, transform_indices = @transform_3, window_bounds = array<i64: 2, 32>}, {pipeline_mode = #tpu.pipeline_mode<synchronous>, transform_indices = @transform_4, window_bounds = array<i64: 2, 96>}]} {
    %c0 = arith.constant 0 : index
    %c0_0 = arith.constant 0 : index
    %0 = vector.load %arg1[%c0, %c0_0] : memref<2x1024xf32, #tpu.memory_space<vmem>>, vector<2x1024xf32>
    %1 = arith.truncf %0 : vector<2x1024xf32> to vector<2x1024xbf16>
    %c0_1 = arith.constant 0 : index
    %c0_2 = arith.constant 0 : index
    %2 = vector.load %arg2[%c0_1, %c0_2] : memref<1024x64xbf16, #tpu.memory_space<vmem>>, vector<1024x64xbf16>
    %cst = arith.constant dense<0.000000e+00> : vector<2x64xf32>
    %3 = tpu.matmul %1, %2, %cst {dimension_numbers = #tpu.dot_dimension_numbers<[1], [0], [0], [1], [0, 0, 1, 1], [], []>} : vector<2x1024xbf16>, vector<1024x64xbf16>, vector<2x64xf32> -> vector<2x64xf32>
    %c0_3 = arith.constant 0 : index
    %c0_4 = arith.constant 0 : index
    %4 = vector.load %arg3[%c0_3, %c0_4] : memref<1x64xf32, #tpu.memory_space<vmem>>, vector<1x64xf32>
    %5 = vector.broadcast %4 : vector<1x64xf32> to vector<2x64xf32>
    %6 = arith.addf %3, %5 : vector<2x64xf32>
    %7 = vector.extract_strided_slice %6 {offsets = [0, 0], sizes = [2, 32], strides = [1, 1]} : vector<2x64xf32> to vector<2x32xf32>
    %8 = vector.extract_strided_slice %6 {offsets = [0, 32], sizes = [2, 32], strides = [1, 1]} : vector<2x64xf32> to vector<2x32xf32>
    %cst_5 = arith.constant 5.000000e-01 : f32
    %9 = vector.broadcast %cst_5 : f32 to vector<2x32xf32>
    %10 = arith.mulf %9, %8 : vector<2x32xf32>
    %11 = math.exp %10 : vector<2x32xf32>
    %c0_6 = arith.constant 0 : index
    %c0_7 = arith.constant 0 : index
    %12 = vector.load %arg4[%c0_6, %c0_7] : memref<2x32xf32, #tpu.memory_space<vmem>>, vector<2x32xf32>
    %13 = arith.mulf %11, %12 : vector<2x32xf32>
    %14 = arith.addf %7, %13 : vector<2x32xf32>
    %c0_8 = arith.constant 0 : index
    %c0_9 = arith.constant 0 : index
    %15 = vector.load %arg5[%c0_8, %c0_9] : memref<2x96xf32, #tpu.memory_space<vmem>>, vector<2x64xf32>
    tpu.vector_store %arg5[%c0_8, %c0_9], %6 {strides = array<i32>} : memref<2x96xf32, #tpu.memory_space<vmem>>, vector<2x64xf32>,
    %c0_10 = arith.constant 0 : index
    %c64 = arith.constant 64 : index
    %16 = vector.load %arg5[%c0_10, %c64] : memref<2x96xf32, #tpu.memory_space<vmem>>, vector<2x32xf32>
    tpu.vector_store %arg5[%c0_10, %c64], %14 {strides = array<i32>} : memref<2x96xf32, #tpu.memory_space<vmem>>, vector<2x32xf32>,
    return
  }
  func.func @transform_0(%arg0: i32) -> (i32, i32) {
    %c0_i32 = arith.constant 0 : i32
    %c0_i32_0 = arith.constant 0 : i32
    return %c0_i32, %arg0 : i32, i32
  }
  func.func @transform_1(%arg0: i32) -> (i32, i32) {
    %c0_i32 = arith.constant 0 : i32
    %c0_i32_0 = arith.constant 0 : i32
    return %arg0, %c0_i32 : i32, i32
  }
  func.func @transform_2(%arg0: i32) -> (i32, i32) {
    %c0_i32 = arith.constant 0 : i32
    %c0_i32_0 = arith.constant 0 : i32
    %c0_i32_1 = arith.constant 0 : i32
    return %c0_i32, %c0_i32_0 : i32, i32
  }
  func.func @transform_3(%arg0: i32) -> (i32, i32) {
    %c0_i32 = arith.constant 0 : i32
    %c0_i32_0 = arith.constant 0 : i32
    %c0_i32_1 = arith.constant 0 : i32
    return %c0_i32, %c0_i32_0 : i32, i32
  }
  func.func @transform_4(%arg0: i32) -> (i32, i32) {
    %c0_i32 = arith.constant 0 : i32
    %c0_i32_0 = arith.constant 0 : i32
    %c0_i32_1 = arith.constant 0 : i32
    return %c0_i32, %c0_i32_0 : i32, i32
  }
}

</mosaic_0001>

<bundles_post_ra>
// kernel: in_bottleneck.1
= control target key start
LH: loop header
LB: loop body
LE: loop exit
PB: predicated region body
PF: predicated region fallthrough
CT: control target
= control target key end

     0   :  { %vm682_vm0 = vcmask 517120   ;;  %s1021_s16 = smov 96   ;;  %s1022_s17 = smov 64   ;;  %vm688_vm1 = vcmask 779776   ;;  %s1258_s1 = inlined_call_operand.vmem [shape: bf16[1024,64], index: 1, kind: input, shape index: {}]   ;;  %s1259_s0 = inlined_call_operand.vmem [shape: f32[2,1024], index: 0, kind: input, shape index: {}]   ;;  %s1260_s2 = inlined_call_operand.vmem [shape: f32[1,64], index: 2, kind: input, shape index: {}]   ;;  %s1261_s3 = inlined_call_operand.vmem [shape: f32[2,32], index: 3, kind: input, shape index: {}]   ;;  %s1262_s4 = inlined_call_operand.vmem [shape: f32[2,96], index: 4, kind: output, shape index: {}]  }
   0x1   :  { %v957_v0 = vld [vmem:[%s1258_s1 + $0x38] sm:$0xff]  ;;  %v956_v4 = vld [vmem:[%s1258_s1 + $0x30] sm:$0xff]  ;;  %v955_v8 = vld [vmem:[%s1258_s1 + $0x28] sm:$0xff] }
   0x2   :  { %v965_v1 = vld [vmem:[%s1258_s1 + $0x78] sm:$0xff]  ;;  %564 = vmatpush.bf16.msra.mxu0 %v957_v0  ;;  %v964_v5 = vld [vmem:[%s1258_s1 + $0x70] sm:$0xff]  ;;  %v963_v9 = vld [vmem:[%s1258_s1 + $0x68] sm:$0xff] }
   0x3   :  { %v973_v2 = vld [vmem:[%s1258_s1 + $0xb8] sm:$0xff]  ;;  %577 = vmatpush.bf16.msra.mxu1 %v965_v1  ;;  %v972_v6 = vld [vmem:[%s1258_s1 + $0xb0] sm:$0xff]  ;;  %v971_v10 = vld [vmem:[%s1258_s1 + $0xa8] sm:$0xff] }
   0x4   :  { %v981_v3 = vld [vmem:[%s1258_s1 + $0xf8] sm:$0xff]  ;;  %590 = vmatpush.bf16.msra.mxu2 %v973_v2  ;;  %v980_v7 = vld [vmem:[%s1258_s1 + $0xf0] sm:$0xff]  ;;  %v979_v11 = vld [vmem:[%s1258_s1 + $0xe8] sm:$0xff] }
   0x5   :  { %603 = vmatpush.bf16.msra.mxu3 %v981_v3  ;;  %v954_v12 = vld [vmem:[%s1258_s1 + $0x20] sm:$0xff]  ;;  %v18_v17 = vld [vmem:[%s1259_s0 + $0x8] sm:$0xff]  ;;  %v953_v18 = vld [vmem:[%s1258_s1 + $0x18] sm:$0xff] }
   0x6   :  { %565 = vmatpush.bf16.msra.mxu0 %v956_v4  ;;  %v962_v13 = vld [vmem:[%s1258_s1 + $0x60] sm:$0xff]  ;;  %v961_v19 = vld [vmem:[%s1258_s1 + $0x58] sm:$0xff]  ;;  %23 = vst [vmem:[#allocation1 + $0x20] ss:$4 sm:$0xff] %v18_v17  ;;  %v952_v22 = vld [vmem:[%s1258_s1 + $0x10] sm:$0xff] }
   0x7   :  { %578 = vmatpush.bf16.msra.mxu1 %v964_v5  ;;  %v970_v14 = vld [vmem:[%s1258_s1 + $0xa0] sm:$0xff]  ;;  %v969_v20 = vld [vmem:[%s1258_s1 + $0x98] sm:$0xff]  ;;  %v960_v23 = vld [vmem:[%s1258_s1 + $0x50] sm:$0xff] }
   0x8   :  { %591 = vmatpush.bf16.msra.mxu2 %v972_v6  ;;  %v978_v15 = vld [vmem:[%s1258_s1 + $0xe0] sm:$0xff]  ;;  %v977_v21 = vld [vmem:[%s1258_s1 + $0xd8] sm:$0xff]  ;;  %v968_v24 = vld [vmem:[%s1258_s1 + $0x90] sm:$0xff] }
   0x9   :  { %604 = vmatpush.bf16.msra.mxu3 %v980_v7  ;;  %v17_v16 = vld [vmem:[%s1259_s0] sm:$0xff]  ;;  %v976_v25 = vld [vmem:[%s1258_s1 + $0xd0] sm:$0xff]  ;;  %v951_v26 = vld [vmem:[%s1258_s1 + $0x8] sm:$0xff] }
   0xa   :  { %566 = vmatpush.bf16.msra.mxu0 %v955_v8  ;;  %21 = vst [vmem:[#allocation1] ss:$4 sm:$0xff] %v17_v16  ;;  %v959_v27 = vld [vmem:[%s1258_s1 + $0x48] sm:$0xff]  ;;  %v950_v30 = vld [vmem:[%s1258_s1] sm:$0xff]  ;;  %v989_v34 = vld [vmem:[%s1258_s1 + $0x138] sm:$0xff] }
   0xb   :  { %579 = vmatpush.bf16.msra.mxu1 %v963_v9  ;;  %v967_v28 = vld [vmem:[%s1258_s1 + $0x88] sm:$0xff]  ;;  %v958_v31 = vld [vmem:[%s1258_s1 + $0x40] sm:$0xff]  ;;  %v997_v35 = vld [vmem:[%s1258_s1 + $0x178] sm:$0xff] }
   0xc   :  { %592 = vmatpush.bf16.msra.mxu2 %v971_v10  ;;  %v975_v29 = vld [vmem:[%s1258_s1 + $0xc8] sm:$0xff]  ;;  %v966_v32 = vld [vmem:[%s1258_s1 + $0x80] sm:$0xff]  ;;  %v1005_v40 = vld [vmem:[%s1258_s1 + $0x1b8] sm:$0xff] }
   0xd   :  { %605 = vmatpush.bf16.msra.mxu3 %v979_v11  ;;  %v974_v33 = vld [vmem:[%s1258_s1 + $0xc0] sm:$0xff]  ;;  %v1013_v41 = vld [vmem:[%s1258_s1 + $0x1f8] sm:$0xff]  ;;  %v988_v46 = vld [vmem:[%s1258_s1 + $0x130] sm:$0xff] }
   0xe   :  { %567 = vmatpush.bf16.msra.mxu0 %v954_v12  ;;  %v996_v47 = vld [vmem:[%s1258_s1 + $0x170] sm:$0xff]  ;;  %v671_v50 = vld [vmem:[%s1261_s3] sm:$0x3]  ;;  %v987_v51 = vld [vmem:[%s1258_s1 + $0x128] sm:$0xff]  ;;  %s1020_s3 = smov 32  }
   0xf   :  { %580 = vmatpush.bf16.msra.mxu1 %v962_v13  ;;  %v1004_v48 = vld [vmem:[%s1258_s1 + $0x1b0] sm:$0xff]  ;;  %v995_v52 = vld [vmem:[%s1258_s1 + $0x168] sm:$0xff]  ;;  %673 = vrot.lane.b32.xlu0 %v671_v50, %s1020_s3  ;;  %v986_v55 = vld [vmem:[%s1258_s1 + $0x120] sm:$0xff] }
  0x10   :  { %593 = vmatpush.bf16.msra.mxu2 %v970_v14  ;;  %v1012_v49 = vld [vmem:[%s1258_s1 + $0x1f0] sm:$0xff]  ;;  %v1003_v53 = vld [vmem:[%s1258_s1 + $0x1a8] sm:$0xff]  ;;  %v994_v56 = vld [vmem:[%s1258_s1 + $0x160] sm:$0xff] }
  0x11   :  { %606 = vmatpush.bf16.msra.mxu3 %v978_v15  ;;  %v26_v36 = vld.sshfl [vmem:[#allocation1 + $0x10] sm:$0xff pattern:$0x73625140]  ;;  %v24_v37 = vld.sshfl [vmem:[#allocation1] sm:$0xff pattern:$0x73625140] }
  0x12   :  { %568 = vmatpush.bf16.msra.mxu0 %v953_v18  ;;  %v27_v38 = vld.sshfl [vmem:[#allocation1 + $0x18] sm:$0xff pattern:$0x73625140]  ;;  %v25_v39 = vld.sshfl [vmem:[#allocation1 + $0x8] sm:$0xff pattern:$0x73625140]  ;;  %v42_v42 = vpack.c.bf16 %v26_v36, %v26_v36  ;;  %v40_v43 = vpack.c.bf16 %v24_v37, %v24_v37 }
  0x13   :  { %581 = vmatpush.bf16.msra.mxu1 %v961_v19  ;;  %v43_v44 = vpack.c.bf16 %v27_v38, %v27_v38  ;;  %v41_v45 = vpack.c.bf16 %v25_v39, %v25_v39  ;;  %v1011_v54 = vld [vmem:[%s1258_s1 + $0x1e8] sm:$0xff]  ;;  %v1002_v57 = vld [vmem:[%s1258_s1 + $0x1a0] sm:$0xff]  ;;  %v985_v59 = vld [vmem:[%s1258_s1 + $0x118] sm:$0xff] }
  0x14   :  { %594 = vmatpush.bf16.msra.mxu2 %v969_v20  ;;  %v1010_v58 = vld [vmem:[%s1258_s1 + $0x1e0] sm:$0xff]  ;;  %v993_v60 = vld [vmem:[%s1258_s1 + $0x158] sm:$0xff]  ;;  %v984_v63 = vld [vmem:[%s1258_s1 + $0x110] sm:$0xff] }
  0x15   :  { %607 = vmatpush.bf16.msra.mxu3 %v977_v21  ;;  %v1001_v61 = vld [vmem:[%s1258_s1 + $0x198] sm:$0xff]  ;;  %v992_v0 = vld [vmem:[%s1258_s1 + $0x150] sm:$0xff]  ;;  %v983_v3 = vld [vmem:[%s1258_s1 + $0x108] sm:$0xff] }
  0x16   :  { %569 = vmatpush.bf16.msra.mxu0 %v952_v22  ;;  %v1009_v62 = vld [vmem:[%s1258_s1 + $0x1d8] sm:$0xff]  ;;  %v1000_v1 = vld [vmem:[%s1258_s1 + $0x190] sm:$0xff]  ;;  %v991_v4 = vld [vmem:[%s1258_s1 + $0x148] sm:$0xff] }
  0x17   :  { %582 = vmatpush.bf16.msra.mxu1 %v960_v23  ;;  %v1008_v2 = vld [vmem:[%s1258_s1 + $0x1d0] sm:$0xff]  ;;  %v999_v5 = vld [vmem:[%s1258_s1 + $0x188] sm:$0xff]  ;;  %v982_v7 = vld [vmem:[%s1258_s1 + $0x100] sm:$0xff] }
  0x18   :  { %595 = vmatpush.bf16.msra.mxu2 %v968_v24  ;;  %v1007_v6 = vld [vmem:[%s1258_s1 + $0x1c8] sm:$0xff]  ;;  %v990_v8 = vld [vmem:[%s1258_s1 + $0x140] sm:$0xff]  ;;  %v30_v13 = vld.sshfl [vmem:[#allocation1 + $0x30] sm:$0xff pattern:$0x73625140] }
  0x19   :  { %608 = vmatpush.bf16.msra.mxu3 %v976_v25  ;;  %v998_v9 = vld [vmem:[%s1258_s1 + $0x180] sm:$0xff]  ;;  %v29_v12 = vld.sshfl [vmem:[#allocation1 + $0x28] sm:$0xff pattern:$0x73625140]  ;;  %v46_v17 = vpack.c.bf16 %v30_v13, %v30_v13 }
  0x1a   :  { %570 = vmatpush.bf16.msra.mxu0 %v951_v26  ;;  %v1006_v10 = vld [vmem:[%s1258_s1 + $0x1c0] sm:$0xff]  ;;  %v31_v14 = vld.sshfl [vmem:[#allocation1 + $0x38] sm:$0xff pattern:$0x73625140]  ;;  %v45_v16 = vpack.c.bf16 %v29_v12, %v29_v12 }
  0x1b   :  { %583 = vmatpush.bf16.msra.mxu1 %v959_v27  ;;  %v28_v11 = vld.sshfl [vmem:[#allocation1 + $0x20] sm:$0xff pattern:$0x73625140]  ;;  %v47_v18 = vpack.c.bf16 %v31_v14, %v31_v14 }
  0x1c   :  { %596 = vmatpush.bf16.msra.mxu2 %v967_v28  ;;  %v44_v15 = vpack.c.bf16 %v28_v11, %v28_v11  ;;  %v1017_v25 = vld [vmem:[%s1260_s2] ss:$0 sm:$0xff] }
  0x1d   :  { %609 = vmatpush.bf16.msra.mxu3 %v975_v29 }
  0x1e   :  { %571 = vmatpush.bf16.msra.mxu0 %v950_v30 }
  0x1f   :  { %584 = vmatpush.bf16.msra.mxu1 %v958_v31 }
  0x20   :  { %597 = vmatpush.bf16.msra.mxu2 %v966_v32 }
  0x21   :  { %610 = vmatpush.bf16.msra.mxu3 %v974_v33  ;;  %572 = vmatmul.bf16.vlgmr.msra.gmra.mxu0 %v40_v43 }
  0x22   :  { %616 = vmatpush.bf16.msrb.mxu0 %v989_v34  ;;  %585 = vmatmul.bf16.vlgmr.msra.gmra.mxu1 %v41_v45 }
  0x23   :  { %629 = vmatpush.bf16.msrb.mxu1 %v997_v35  ;;  %598 = vmatmul.bf16.vlgmr.msra.gmra.mxu2 %v42_v42 }
  0x24   :  { %642 = vmatpush.bf16.msrb.mxu2 %v1005_v40  ;;  %611 = vmatmul.bf16.vlgmr.msra.gmra.mxu3 %v43_v44 }
  0x25   :  { %655 = vmatpush.bf16.msrb.mxu3 %v1013_v41 }
  0x26   :  { %617 = vmatpush.bf16.msrb.mxu0 %v988_v46 }
  0x27   :  { %630 = vmatpush.bf16.msrb.mxu1 %v996_v47 }
  0x28   :  { %643 = vmatpush.bf16.msrb.mxu2 %v1004_v48 }
  0x29   :  { %656 = vmatpush.bf16.msrb.mxu3 %v1012_v49 }
  0x2a   :  { %618 = vmatpush.bf16.msrb.mxu0 %v987_v51 }
  0x2b   :  { %631 = vmatpush.bf16.msrb.mxu1 %v995_v52 }
  0x2c   :  { %644 = vmatpush.bf16.msrb.mxu2 %v1003_v53 }
  0x2d   :  { %657 = vmatpush.bf16.msrb.mxu3 %v1011_v54 }
  0x2e   :  { %619 = vmatpush.bf16.msrb.mxu0 %v986_v55 }
  0x2f   :  { %632 = vmatpush.bf16.msrb.mxu1 %v994_v56 }
  0x30   :  { %645 = vmatpush.bf16.msrb.mxu2 %v1002_v57 }
  0x31   :  { %658 = vmatpush.bf16.msrb.mxu3 %v1010_v58 }
  0x32   :  { %620 = vmatpush.bf16.msrb.mxu0 %v985_v59 }
  0x33   :  { %633 = vmatpush.bf16.msrb.mxu1 %v993_v60 }
  0x34   :  { %646 = vmatpush.bf16.msrb.mxu2 %v1001_v61 }
  0x35   :  { %659 = vmatpush.bf16.msrb.mxu3 %v1009_v62 }
  0x36   :  { %621 = vmatpush.bf16.msrb.mxu0 %v984_v63 }
  0x37   :  { %634 = vmatpush.bf16.msrb.mxu1 %v992_v0 }
  0x38   :  { %647 = vmatpush.bf16.msrb.mxu2 %v1000_v1 }
  0x39   :  { %660 = vmatpush.bf16.msrb.mxu3 %v1008_v2 }
  0x3a   :  { %622 = vmatpush.bf16.msrb.mxu0 %v983_v3 }
  0x3b   :  { %635 = vmatpush.bf16.msrb.mxu1 %v991_v4 }
  0x3c   :  { %648 = vmatpush.bf16.msrb.mxu2 %v999_v5 }
  0x3d   :  { %661 = vmatpush.bf16.msrb.mxu3 %v1007_v6 }
  0x3e   :  { %623 = vmatpush.bf16.msrb.mxu0 %v982_v7 }
  0x3f   :  { %636 = vmatpush.bf16.msrb.mxu1 %v990_v8 }
  0x40   :  { %649 = vmatpush.bf16.msrb.mxu2 %v998_v9 }
  0x41   :  { %662 = vmatpush.bf16.msrb.mxu3 %v1006_v10  ;;  %624 = vmatmul.bf16.vlgmr.msrb.gmra.mxu0 %v44_v15 }
  0x42   :  { %637 = vmatmul.bf16.vlgmr.msrb.gmra.mxu1 %v45_v16 }
  0x43   :  { %650 = vmatmul.bf16.vlgmr.msrb.gmra.mxu2 %v46_v17 }
  0x44   :  { %663 = vmatmul.bf16.vlgmr.msrb.gmra.mxu3 %v47_v18 }
  0x81   :  { %v674_v46 = vpop.permute.xlu0 %673 }
  0x9e   :  { %v573_v19 = vpop.f32.mrf.mxu0 }
  0x9f   :  { %v586_v20 = vpop.f32.mrf.mxu1  ;;  %v574_v28 = vadd.f32 %v1017_v25, %v573_v19 }
  0xa1   :  { %v587_v29 = vadd.f32 %v586_v20, %v574_v28 }
  0xa6   :  { %v599_v21 = vpop.f32.mrf.mxu2  ;;  %v575_v23 = vpop.f32.mrf.mxu0 }
  0xa7   :  { %v612_v22 = vpop.f32.mrf.mxu3  ;;  %v588_v24 = vpop.f32.mrf.mxu1  ;;  %v600_v30 = vadd.f32 %v599_v21, %v587_v29 }
  0xa9   :  { %v613_v31 = vadd.f32 %v612_v22, %v600_v30 }
  0xae   :  { %v601_v26 = vpop.f32.mrf.mxu2 }
  0xaf   :  { %v614_v27 = vpop.f32.mrf.mxu3 }
  0xbe   :  { %v625_v32 = vpop.f32.mrf.mxu0 }
  0xbf   :  { %v638_v33 = vpop.f32.mrf.mxu1  ;;  %v626_v34 = vadd.f32 %v625_v32, %v613_v31 }
  0xc1   :  { %v639_v35 = vadd.f32 %v638_v33, %v626_v34 }
  0xc6   :  { %v651_v36 = vpop.f32.mrf.mxu2  ;;  %v627_v39 = vpop.f32.mrf.mxu0 }
  0xc7   :  { %v664_v37 = vpop.f32.mrf.mxu3  ;;  %v652_v38 = vadd.f32 %v651_v36, %v639_v35  ;;  %v640_v40 = vpop.f32.mrf.mxu1 }
  0xc9   :  { %v665_v41 = vadd.f32 %v664_v37, %v652_v38 }
  0xcb   :  { %v668_v42 = vmul.f32 0.5, %v665_v41  ;;  %683 = vst.msk [vmem:[%s1262_s4] sm:$0x3] %vm682_vm0, %v665_v41 }
  0xcd   :  { %v669_v43 = vmul.f32 1.442695, %v668_v42 }
  0xce   :  { %v653_v44 = vpop.f32.mrf.mxu2 }
  0xcf   :  { %v666_v45 = vpop.f32.mrf.mxu3  ;;  %1018 = vpow2.f32 %v669_v43 }
  0xd5   :  { %v1019_v47 = vpop.eup %1018 }
  0xd6   :  { %v676_v48 = vmul.f32 %v1019_v47, %v674_v46 }
  0xd8   :  { %678 = vrot.lane.b32.xlu0 %v676_v48, %s1021_s16 }
 0x14a   :  { %v679_v49 = vpop.permute.xlu0 %678 }
 0x14b   :  { %v681_v50 = vadd.f32 %v679_v49, %v665_v41 }
 0x14d   :  { %685 = vrot.lane.b32.xlu1 %v681_v50, %s1022_s17 }
 0x1bf   :  { %v686_v51 = vpop.permute.xlu1 %685 }
 0x1c0   :  { %689 = vst.msk [vmem:[%s1262_s4] sm:$0x3] %vm688_vm1, %v686_v51 }

</bundles_post_ra>
